<compile_context>
chip_gen: v7x
topology: tpu7x:2x2x1
jax: 0.10.0
libtpu: 0.0.40
codegen_flags: <defaults>
</compile_context>

<pallas_src>
import math
import jax
import jax.numpy as jnp
from jax.experimental import pallas as pl
from jax.experimental.pallas import tpu as pltpu


def _round_up(x, m):
    return ((x + m - 1) // m) * m


def equal_embed(indices, weight, *, rows_per_step=512):
    """Forward pass of EqualEmbed.

    indices : integer array, any shape (e.g. (B, S))
    weight  : (num_embeddings, embedding_dim) float ("weight_orig", ~N(0,1))
    returns : indices.shape + (embedding_dim,), dtype of `weight`
    """
    orig_shape = indices.shape
    idx_flat = indices.reshape(-1).astype(jnp.int32)
    T = int(idx_flat.shape[0])
    V, D = weight.shape

    # Equalized learning-rate scaling: fan_in = embedding_dim.
    scale = math.sqrt(2.0 / D)

    # Large, sublane-aligned output tile; clamp to the (padded) token count so
    # tiny inputs don't stream useless padding.
    TB = max(8, min(rows_per_step, _round_up(T, 8)))
    T_pad = _round_up(T, TB)
    if T_pad != T:
        # Pad with index 0 (a valid row); the tail is sliced off afterwards.
        idx_flat = jnp.pad(idx_flat, (0, T_pad - T))
    # (T_pad, 1) layout: block (TB, 1) is (8,128)-legal (TB % 8 == 0, last dim
    # equals the full array dim) and lands in the kernel as the per-row column
    # the vectorized select needs.
    idx_col = idx_flat.reshape(T_pad, 1)
    num_tiles = T_pad // TB

    def kernel(idx_ref, w_ref, o_ref):
        # idx_ref: VMEM (TB, 1) int32 — token indices for this tile
        # w_ref  : VMEM (V, D)      — resident weight table (constant block idx)
        # o_ref  : VMEM (TB, D)     — output tile (one dense store per step)
        idx = idx_ref[...]                                   # (TB, 1)
        # Scale the small table once (V*D elems), not every output element.
        table = w_ref[...].astype(jnp.float32) * scale       # (V, D)
        # Vectorized gather: V-way compare/select on the VPU.  V is small for
        # a ProGAN class embedding, so this is a handful of selects per vreg
        # and the kernel stays in the HBM-writeback-bound regime.
        acc = jnp.zeros((TB, D), jnp.float32)
        for v in range(V):                                   # static unroll
            acc = jnp.where(idx == v, table[v, :], acc)
        o_ref[...] = acc.astype(o_ref.dtype)                 # single dense store

    out_flat = pl.pallas_call(
        kernel,
        out_shape=jax.ShapeDtypeStruct((T_pad, D), weight.dtype),
        grid_spec=pltpu.PrefetchScalarGridSpec(
            num_scalar_prefetch=0,
            grid=(num_tiles,),
            in_specs=[
                # Index tile: pipelined VMEM input, one (TB, 1) block per step.
                pl.BlockSpec((TB, 1), lambda i: (i, 0)),
                # Whole table, constant block index -> DMA'd once and reused.
                pl.BlockSpec((V, D), lambda i: (0, 0)),
            ],
            out_specs=pl.BlockSpec((TB, D), lambda i: (i, 0)),
        ),
        compiler_params=pltpu.CompilerParams(
            dimension_semantics=("parallel",)),
    )(idx_col, weight)

    return out_flat[:T].reshape(*orig_shape, D)


if __name__ == "__main__":
    # Module config: EqualEmbed(num_embeddings=16, embedding_dim=128)
    NUM_EMBED, EMBED_DIM = 16, 128
    B, S = 2, 8

    key = jax.random.PRNGKey(0)
    k_idx, k_w = jax.random.split(key)
    idx = jax.random.randint(k_idx, (B, S), 0, NUM_EMBED, dtype=jnp.int32)
    weight = jax.random.normal(k_w, (NUM_EMBED, EMBED_DIM), dtype=jnp.float32)

    out = equal_embed(idx, weight)
    out = jax.block_until_ready(out)

    # Reference: plain gather from the equal-LR-scaled table.
    scale = math.sqrt(2.0 / EMBED_DIM)
    ref = jnp.take(weight, idx.reshape(-1), axis=0).reshape(B, S, EMBED_DIM) * scale

    assert out.shape == (B, S, EMBED_DIM), out.shape
    assert jnp.allclose(out, ref, rtol=1e-6, atol=1e-6), \
        float(jnp.max(jnp.abs(out - ref)))

    print("KERNEL_OK")
</pallas_src>

<mosaic_0001>
module attributes {stable_mosaic.version = 11 : i64} {
  func.func @kernel(%arg0: i32, %arg1: memref<16x1xi32, #tpu.memory_space<vmem>>, %arg2: memref<16x128xf32, #tpu.memory_space<vmem>>, %arg3: memref<16x128xf32, #tpu.memory_space<vmem>>) attributes {dimension_semantics = [#tpu.dimension_semantics<parallel>], iteration_bounds = array<i64: 1>, scalar_prefetch = 0 : i64, scratch_operands = 0 : i64, tpu.core_type = #tpu.core_type<tc>, window_params = [{transform_indices = @transform_0, window_bounds = array<i64: 16, 1>}, {pipeline_mode = #tpu.pipeline_mode<synchronous>, transform_indices = @transform_1, window_bounds = array<i64: 16, 128>}, {transform_indices = @transform_2, window_bounds = array<i64: 16, 128>}]} {
    %c0 = arith.constant 0 : index
    %c0_0 = arith.constant 0 : index
    %0 = vector.load %arg1[%c0, %c0_0] : memref<16x1xi32, #tpu.memory_space<vmem>>, vector<16x1xi32>
    %c0_1 = arith.constant 0 : index
    %c0_2 = arith.constant 0 : index
    %1 = vector.load %arg2[%c0_1, %c0_2] : memref<16x128xf32, #tpu.memory_space<vmem>>, vector<16x128xf32>
    %cst = arith.constant 1.250000e-01 : f32
    %2 = vector.broadcast %cst : f32 to vector<16x128xf32>
    %3 = arith.mulf %1, %2 : vector<16x128xf32>
    %cst_3 = arith.constant 0.000000e+00 : f32
    %4 = vector.broadcast %cst_3 : f32 to vector<16x128xf32>
    %c0_i32 = arith.constant 0 : i32
    %5 = vector.broadcast %c0_i32 : i32 to vector<16x1xi32>
    %6 = arith.cmpi eq, %0, %5 : vector<16x1xi32>
    %7 = vector.extract_strided_slice %3 {offsets = [0, 0], sizes = [1, 128], strides = [1, 1]} : vector<16x128xf32> to vector<1x128xf32>
    %8 = vector.shape_cast %7 : vector<1x128xf32> to vector<128xf32>
    %9 = vector.shape_cast %6 : vector<16x1xi1> to vector<16x1xi1>
    %10 = vector.broadcast %9 : vector<16x1xi1> to vector<16x128xi1>
    %11 = vector.shape_cast %8 : vector<128xf32> to vector<1x128xf32>
    %12 = vector.broadcast %11 : vector<1x128xf32> to vector<16x128xf32>
    %13 = arith.select %10, %12, %4 : vector<16x128xi1>, vector<16x128xf32>
    %c1_i32 = arith.constant 1 : i32
    %14 = vector.broadcast %c1_i32 : i32 to vector<16x1xi32>
    %15 = arith.cmpi eq, %0, %14 : vector<16x1xi32>
    %16 = vector.extract_strided_slice %3 {offsets = [1, 0], sizes = [1, 128], strides = [1, 1]} : vector<16x128xf32> to vector<1x128xf32>
    %17 = vector.shape_cast %16 : vector<1x128xf32> to vector<128xf32>
    %18 = vector.shape_cast %15 : vector<16x1xi1> to vector<16x1xi1>
    %19 = vector.broadcast %18 : vector<16x1xi1> to vector<16x128xi1>
    %20 = vector.shape_cast %17 : vector<128xf32> to vector<1x128xf32>
    %21 = vector.broadcast %20 : vector<1x128xf32> to vector<16x128xf32>
    %22 = arith.select %19, %21, %13 : vector<16x128xi1>, vector<16x128xf32>
    %c2_i32 = arith.constant 2 : i32
    %23 = vector.broadcast %c2_i32 : i32 to vector<16x1xi32>
    %24 = arith.cmpi eq, %0, %23 : vector<16x1xi32>
    %25 = vector.extract_strided_slice %3 {offsets = [2, 0], sizes = [1, 128], strides = [1, 1]} : vector<16x128xf32> to vector<1x128xf32>
    %26 = vector.shape_cast %25 : vector<1x128xf32> to vector<128xf32>
    %27 = vector.shape_cast %24 : vector<16x1xi1> to vector<16x1xi1>
    %28 = vector.broadcast %27 : vector<16x1xi1> to vector<16x128xi1>
    %29 = vector.shape_cast %26 : vector<128xf32> to vector<1x128xf32>
    %30 = vector.broadcast %29 : vector<1x128xf32> to vector<16x128xf32>
    %31 = arith.select %28, %30, %22 : vector<16x128xi1>, vector<16x128xf32>
    %c3_i32 = arith.constant 3 : i32
    %32 = vector.broadcast %c3_i32 : i32 to vector<16x1xi32>
    %33 = arith.cmpi eq, %0, %32 : vector<16x1xi32>
    %34 = vector.extract_strided_slice %3 {offsets = [3, 0], sizes = [1, 128], strides = [1, 1]} : vector<16x128xf32> to vector<1x128xf32>
    %35 = vector.shape_cast %34 : vector<1x128xf32> to vector<128xf32>
    %36 = vector.shape_cast %33 : vector<16x1xi1> to vector<16x1xi1>
    %37 = vector.broadcast %36 : vector<16x1xi1> to vector<16x128xi1>
    %38 = vector.shape_cast %35 : vector<128xf32> to vector<1x128xf32>
    %39 = vector.broadcast %38 : vector<1x128xf32> to vector<16x128xf32>
    %40 = arith.select %37, %39, %31 : vector<16x128xi1>, vector<16x128xf32>
    %c4_i32 = arith.constant 4 : i32
    %41 = vector.broadcast %c4_i32 : i32 to vector<16x1xi32>
    %42 = arith.cmpi eq, %0, %41 : vector<16x1xi32>
    %43 = vector.extract_strided_slice %3 {offsets = [4, 0], sizes = [1, 128], strides = [1, 1]} : vector<16x128xf32> to vector<1x128xf32>
    %44 = vector.shape_cast %43 : vector<1x128xf32> to vector<128xf32>
    %45 = vector.shape_cast %42 : vector<16x1xi1> to vector<16x1xi1>
    %46 = vector.broadcast %45 : vector<16x1xi1> to vector<16x128xi1>
    %47 = vector.shape_cast %44 : vector<128xf32> to vector<1x128xf32>
    %48 = vector.broadcast %47 : vector<1x128xf32> to vector<16x128xf32>
    %49 = arith.select %46, %48, %40 : vector<16x128xi1>, vector<16x128xf32>
    %c5_i32 = arith.constant 5 : i32
    %50 = vector.broadcast %c5_i32 : i32 to vector<16x1xi32>
    %51 = arith.cmpi eq, %0, %50 : vector<16x1xi32>
    %52 = vector.extract_strided_slice %3 {offsets = [5, 0], sizes = [1, 128], strides = [1, 1]} : vector<16x128xf32> to vector<1x128xf32>
    %53 = vector.shape_cast %52 : vector<1x128xf32> to vector<128xf32>
    %54 = vector.shape_cast %51 : vector<16x1xi1> to vector<16x1xi1>
    %55 = vector.broadcast %54 : vector<16x1xi1> to vector<16x128xi1>
    %56 = vector.shape_cast %53 : vector<128xf32> to vector<1x128xf32>
    %57 = vector.broadcast %56 : vector<1x128xf32> to vector<16x128xf32>
    %58 = arith.select %55, %57, %49 : vector<16x128xi1>, vector<16x128xf32>
    %c6_i32 = arith.constant 6 : i32
    %59 = vector.broadcast %c6_i32 : i32 to vector<16x1xi32>
    %60 = arith.cmpi eq, %0, %59 : vector<16x1xi32>
    %61 = vector.extract_strided_slice %3 {offsets = [6, 0], sizes = [1, 128], strides = [1, 1]} : vector<16x128xf32> to vector<1x128xf32>
    %62 = vector.shape_cast %61 : vector<1x128xf32> to vector<128xf32>
    %63 = vector.shape_cast %60 : vector<16x1xi1> to vector<16x1xi1>
    %64 = vector.broadcast %63 : vector<16x1xi1> to vector<16x128xi1>
    %65 = vector.shape_cast %62 : vector<128xf32> to vector<1x128xf32>
    %66 = vector.broadcast %65 : vector<1x128xf32> to vector<16x128xf32>
    %67 = arith.select %64, %66, %58 : vector<16x128xi1>, vector<16x128xf32>
    %c7_i32 = arith.constant 7 : i32
    %68 = vector.broadcast %c7_i32 : i32 to vector<16x1xi32>
    %69 = arith.cmpi eq, %0, %68 : vector<16x1xi32>
    %70 = vector.extract_strided_slice %3 {offsets = [7, 0], sizes = [1, 128], strides = [1, 1]} : vector<16x128xf32> to vector<1x128xf32>
    %71 = vector.shape_cast %70 : vector<1x128xf32> to vector<128xf32>
    %72 = vector.shape_cast %69 : vector<16x1xi1> to vector<16x1xi1>
    %73 = vector.broadcast %72 : vector<16x1xi1> to vector<16x128xi1>
    %74 = vector.shape_cast %71 : vector<128xf32> to vector<1x128xf32>
    %75 = vector.broadcast %74 : vector<1x128xf32> to vector<16x128xf32>
    %76 = arith.select %73, %75, %67 : vector<16x128xi1>, vector<16x128xf32>
    %c8_i32 = arith.constant 8 : i32
    %77 = vector.broadcast %c8_i32 : i32 to vector<16x1xi32>
    %78 = arith.cmpi eq, %0, %77 : vector<16x1xi32>
    %79 = vector.extract_strided_slice %3 {offsets = [8, 0], sizes = [1, 128], strides = [1, 1]} : vector<16x128xf32> to vector<1x128xf32>
    %80 = vector.shape_cast %79 : vector<1x128xf32> to vector<128xf32>
    %81 = vector.shape_cast %78 : vector<16x1xi1> to vector<16x1xi1>
    %82 = vector.broadcast %81 : vector<16x1xi1> to vector<16x128xi1>
    %83 = vector.shape_cast %80 : vector<128xf32> to vector<1x128xf32>
    %84 = vector.broadcast %83 : vector<1x128xf32> to vector<16x128xf32>
    %85 = arith.select %82, %84, %76 : vector<16x128xi1>, vector<16x128xf32>
    %c9_i32 = arith.constant 9 : i32
    %86 = vector.broadcast %c9_i32 : i32 to vector<16x1xi32>
    %87 = arith.cmpi eq, %0, %86 : vector<16x1xi32>
    %88 = vector.extract_strided_slice %3 {offsets = [9, 0], sizes = [1, 128], strides = [1, 1]} : vector<16x128xf32> to vector<1x128xf32>
    %89 = vector.shape_cast %88 : vector<1x128xf32> to vector<128xf32>
    %90 = vector.shape_cast %87 : vector<16x1xi1> to vector<16x1xi1>
    %91 = vector.broadcast %90 : vector<16x1xi1> to vector<16x128xi1>
    %92 = vector.shape_cast %89 : vector<128xf32> to vector<1x128xf32>
    %93 = vector.broadcast %92 : vector<1x128xf32> to vector<16x128xf32>
    %94 = arith.select %91, %93, %85 : vector<16x128xi1>, vector<16x128xf32>
    %c10_i32 = arith.constant 10 : i32
    %95 = vector.broadcast %c10_i32 : i32 to vector<16x1xi32>
    %96 = arith.cmpi eq, %0, %95 : vector<16x1xi32>
    %97 = vector.extract_strided_slice %3 {offsets = [10, 0], sizes = [1, 128], strides = [1, 1]} : vector<16x128xf32> to vector<1x128xf32>
    %98 = vector.shape_cast %97 : vector<1x128xf32> to vector<128xf32>
    %99 = vector.shape_cast %96 : vector<16x1xi1> to vector<16x1xi1>
    %100 = vector.broadcast %99 : vector<16x1xi1> to vector<16x128xi1>
    %101 = vector.shape_cast %98 : vector<128xf32> to vector<1x128xf32>
    %102 = vector.broadcast %101 : vector<1x128xf32> to vector<16x128xf32>
    %103 = arith.select %100, %102, %94 : vector<16x128xi1>, vector<16x128xf32>
    %c11_i32 = arith.constant 11 : i32
    %104 = vector.broadcast %c11_i32 : i32 to vector<16x1xi32>
    %105 = arith.cmpi eq, %0, %104 : vector<16x1xi32>
    %106 = vector.extract_strided_slice %3 {offsets = [11, 0], sizes = [1, 128], strides = [1, 1]} : vector<16x128xf32> to vector<1x128xf32>
    %107 = vector.shape_cast %106 : vector<1x128xf32> to vector<128xf32>
    %108 = vector.shape_cast %105 : vector<16x1xi1> to vector<16x1xi1>
    %109 = vector.broadcast %108 : vector<16x1xi1> to vector<16x128xi1>
    %110 = vector.shape_cast %107 : vector<128xf32> to vector<1x128xf32>
    %111 = vector.broadcast %110 : vector<1x128xf32> to vector<16x128xf32>
    %112 = arith.select %109, %111, %103 : vector<16x128xi1>, vector<16x128xf32>
    %c12_i32 = arith.constant 12 : i32
    %113 = vector.broadcast %c12_i32 : i32 to vector<16x1xi32>
    %114 = arith.cmpi eq, %0, %113 : vector<16x1xi32>
    %115 = vector.extract_strided_slice %3 {offsets = [12, 0], sizes = [1, 128], strides = [1, 1]} : vector<16x128xf32> to vector<1x128xf32>
    %116 = vector.shape_cast %115 : vector<1x128xf32> to vector<128xf32>
    %117 = vector.shape_cast %114 : vector<16x1xi1> to vector<16x1xi1>
    %118 = vector.broadcast %117 : vector<16x1xi1> to vector<16x128xi1>
    %119 = vector.shape_cast %116 : vector<128xf32> to vector<1x128xf32>
    %120 = vector.broadcast %119 : vector<1x128xf32> to vector<16x128xf32>
    %121 = arith.select %118, %120, %112 : vector<16x128xi1>, vector<16x128xf32>
    %c13_i32 = arith.constant 13 : i32
    %122 = vector.broadcast %c13_i32 : i32 to vector<16x1xi32>
    %123 = arith.cmpi eq, %0, %122 : vector<16x1xi32>
    %124 = vector.extract_strided_slice %3 {offsets = [13, 0], sizes = [1, 128], strides = [1, 1]} : vector<16x128xf32> to vector<1x128xf32>
    %125 = vector.shape_cast %124 : vector<1x128xf32> to vector<128xf32>
    %126 = vector.shape_cast %123 : vector<16x1xi1> to vector<16x1xi1>
    %127 = vector.broadcast %126 : vector<16x1xi1> to vector<16x128xi1>
    %128 = vector.shape_cast %125 : vector<128xf32> to vector<1x128xf32>
    %129 = vector.broadcast %128 : vector<1x128xf32> to vector<16x128xf32>
    %130 = arith.select %127, %129, %121 : vector<16x128xi1>, vector<16x128xf32>
    %c14_i32 = arith.constant 14 : i32
    %131 = vector.broadcast %c14_i32 : i32 to vector<16x1xi32>
    %132 = arith.cmpi eq, %0, %131 : vector<16x1xi32>
    %133 = vector.extract_strided_slice %3 {offsets = [14, 0], sizes = [1, 128], strides = [1, 1]} : vector<16x128xf32> to vector<1x128xf32>
    %134 = vector.shape_cast %133 : vector<1x128xf32> to vector<128xf32>
    %135 = vector.shape_cast %132 : vector<16x1xi1> to vector<16x1xi1>
    %136 = vector.broadcast %135 : vector<16x1xi1> to vector<16x128xi1>
    %137 = vector.shape_cast %134 : vector<128xf32> to vector<1x128xf32>
    %138 = vector.broadcast %137 : vector<1x128xf32> to vector<16x128xf32>
    %139 = arith.select %136, %138, %130 : vector<16x128xi1>, vector<16x128xf32>
    %c15_i32 = arith.constant 15 : i32
    %140 = vector.broadcast %c15_i32 : i32 to vector<16x1xi32>
    %141 = arith.cmpi eq, %0, %140 : vector<16x1xi32>
    %142 = vector.extract_strided_slice %3 {offsets = [15, 0], sizes = [1, 128], strides = [1, 1]} : vector<16x128xf32> to vector<1x128xf32>
    %143 = vector.shape_cast %142 : vector<1x128xf32> to vector<128xf32>
    %144 = vector.shape_cast %141 : vector<16x1xi1> to vector<16x1xi1>
    %145 = vector.broadcast %144 : vector<16x1xi1> to vector<16x128xi1>
    %146 = vector.shape_cast %143 : vector<128xf32> to vector<1x128xf32>
    %147 = vector.broadcast %146 : vector<1x128xf32> to vector<16x128xf32>
    %148 = arith.select %145, %147, %139 : vector<16x128xi1>, vector<16x128xf32>
    %c0_4 = arith.constant 0 : index
    %c0_5 = arith.constant 0 : index
    %149 = vector.load %arg3[%c0_4, %c0_5] : memref<16x128xf32, #tpu.memory_space<vmem>>, vector<16x128xf32>
    tpu.vector_store %arg3[%c0_4, %c0_5], %148 {strides = array<i32>} : memref<16x128xf32, #tpu.memory_space<vmem>>, vector<16x128xf32>,
    return
  }
  func.func @transform_0(%arg0: i32) -> (i32, i32) {
    %c0_i32 = arith.constant 0 : i32
    %c0_i32_0 = arith.constant 0 : i32
    return %arg0, %c0_i32 : i32, i32
  }
  func.func @transform_1(%arg0: i32) -> (i32, i32) {
    %c0_i32 = arith.constant 0 : i32
    %c0_i32_0 = arith.constant 0 : i32
    %c0_i32_1 = arith.constant 0 : i32
    return %c0_i32, %c0_i32_0 : i32, i32
  }
  func.func @transform_2(%arg0: i32) -> (i32, i32) {
    %c0_i32 = arith.constant 0 : i32
    %c0_i32_0 = arith.constant 0 : i32
    return %arg0, %c0_i32 : i32, i32
  }
}

</mosaic_0001>

<bundles_post_ra>
// kernel: tpu_custom_call.1
= control target key start
LH: loop header
LB: loop body
LE: loop exit
PB: predicated region body
PF: predicated region fallthrough
CT: control target
= control target key end

     0   :  { %v354_v2 = vmov 0   ;;  %s546_s0 = inlined_call_operand.vmem [shape: s32[16,1], index: 0, kind: input, shape index: {}]   ;;  %s547_s1 = inlined_call_operand.vmem [shape: f32[16,128], index: 1, kind: input, shape index: {}]   ;;  %s548_s2 = inlined_call_operand.hbm [shape: f32[16,128], index: 2, kind: output, shape index: {}]  }
   0x1   :  { %v376_v0 = vld [vmem:[%s546_s0] sm:$0xff]  ;;  %v381_v1 = vld [vmem:[%s546_s0 + $0x8] sm:$0xff]  ;;  %329 = vset.pattern.permute.xlu1 %v354_v2  ;;  %328 = vset.pattern.permute.xlu0 %v354_v2 }
   0x2   :  { %vm36_vm0 = vcmp.eq.s32.totalorder %v376_v0, 1  ;;  %vm18_vm1 = vcmp.eq.s32.totalorder %v376_v0, 0  ;;  %vm37_vm2 = vcmp.eq.s32.totalorder %v381_v1, 1  ;;  %vm19_vm3 = vcmp.eq.s32.totalorder %v381_v1, 0 }
   0x3   :  { %7 = vsyncpa [#allocation3], 0  ;;  %v38_v3 = vsel %vm36_vm0, 1, %v354_v2  ;;  %v20_v4 = vsel %vm18_vm1, 1, %v354_v2  ;;  %v39_v5 = vsel %vm37_vm2, 1, %v354_v2  ;;  %v21_v6 = vsel %vm19_vm3, 1, %v354_v2 }
   0x4   :  { %41 = vperm.xlu1 %329, %v38_v3   ;;  %23 = vperm.xlu0 %328, %v20_v4   ;;  %vm55_vm4 = vcmp.eq.s32.totalorder %v381_v1, 2  ;;  %vm54_vm5 = vcmp.eq.s32.totalorder %v376_v0, 2  ;;  %vm73_vm6 = vcmp.eq.s32.totalorder %v381_v1, 3  ;;  %vm72_vm7 = vcmp.eq.s32.totalorder %v376_v0, 3  ;;  %v14_v55 = vld [vmem:[%s547_s1] sm:$0xff]  ;;  %v15_v61 = vld [vmem:[%s547_s1 + $0x8] sm:$0xff] }
   0x5   :  { %v57_v7 = vsel %vm55_vm4, 1, %v354_v2  ;;  %v56_v8 = vsel %vm54_vm5, 1, %v354_v2  ;;  %v75_v9 = vsel %vm73_vm6, 1, %v354_v2  ;;  %v74_v10 = vsel %vm72_vm7, 1, %v354_v2  ;;  %s355_s1 = smov [#allocation2]  }
   0x6   :  { %vm91_vm8 = vcmp.eq.s32.totalorder %v381_v1, 4  ;;  %vm90_vm9 = vcmp.eq.s32.totalorder %v376_v0, 4  ;;  %vm109_vm10 = vcmp.eq.s32.totalorder %v381_v1, 5  ;;  %vm108_vm11 = vcmp.eq.s32.totalorder %v376_v0, 5  ;;  %s313_s16 = sshll.u32 %s355_s1, 4  ;;  %s314_s16 = int_to_ptr.vmem [resolvable:$true] %s313_s16 }
   0x7   :  { %v93_v11 = vsel %vm91_vm8, 1, %v354_v2  ;;  %v92_v12 = vsel %vm90_vm9, 1, %v354_v2  ;;  %v111_v13 = vsel %vm109_vm10, 1, %v354_v2  ;;  %v110_v14 = vsel %vm108_vm11, 1, %v354_v2  ;;  %s330_s17 = scalar_lea.vmem %s314_s16, 256  ;;  %p335_p1 = scmp.lt.s32.totalorder %s314_s16, %s314_s16 }
   0x8   :  { %44 = vperm.xlu1 %329, %v39_v5   ;;  %26 = vperm.xlu0 %328, %v21_v6   ;;  %vm127_vm12 = vcmp.eq.s32.totalorder %v381_v1, 6  ;;  %vm126_vm13 = vcmp.eq.s32.totalorder %v376_v0, 6  ;;  %vm145_vm14 = vcmp.eq.s32.totalorder %v381_v1, 7  ;;  %vm144_vm15 = vcmp.eq.s32.totalorder %v376_v0, 7  ;;  %p331_p0 = scmp.ne.s32.totalorder %s314_s16, %s330_s17  ;;  %p336_p2 = scmp.lt.s32.totalorder %s330_s17, %s330_s17 }
   0x9   :  { %v129_v15 = vsel %vm127_vm12, 1, %v354_v2  ;;  %v128_v16 = vsel %vm126_vm13, 1, %v354_v2  ;;  %v147_v17 = vsel %vm145_vm14, 1, %v354_v2  ;;  %v146_v18 = vsel %vm144_vm15, 1, %v354_v2 }
   0xa   :  { %vm163_vm0 = vcmp.eq.s32.totalorder %v381_v1, 8  ;;  %vm162_vm1 = vcmp.eq.s32.totalorder %v376_v0, 8  ;;  %vm181_vm2 = vcmp.eq.s32.totalorder %v381_v1, 9  ;;  %vm180_vm3 = vcmp.eq.s32.totalorder %v376_v0, 9  ;;  %p337_p3 = por %p336_p2, %p335_p1 }
   0xb   :  { %v165_v19 = vsel %vm163_vm0, 1, %v354_v2  ;;  %v164_v20 = vsel %vm162_vm1, 1, %v354_v2  ;;  %v183_v21 = vsel %vm181_vm2, 1, %v354_v2  ;;  %v182_v22 = vsel %vm180_vm3, 1, %v354_v2 }
   0xc   :  { %62 = vperm.xlu1 %329, %v57_v7   ;;  %59 = vperm.xlu0 %328, %v56_v8   ;;  %vm199_vm4 = vcmp.eq.s32.totalorder %v381_v1, 10  ;;  %vm198_vm5 = vcmp.eq.s32.totalorder %v376_v0, 10  ;;  %vm217_vm6 = vcmp.eq.s32.totalorder %v381_v1, 11  ;;  %vm216_vm7 = vcmp.eq.s32.totalorder %v376_v0, 11  ;;  %p338_p4 = pnand %p337_p3, %p331_p0 }
   0xd   :  { %v201_v23 = vsel %vm199_vm4, 1, %v354_v2  ;;  %v200_v24 = vsel %vm198_vm5, 1, %v354_v2  ;;  %v219_v25 = vsel %vm217_vm6, 1, %v354_v2  ;;  %v218_v26 = vsel %vm216_vm7, 1, %v354_v2 }
   0xe   :  { %vm235_vm8 = vcmp.eq.s32.totalorder %v381_v1, 12  ;;  %vm234_vm9 = vcmp.eq.s32.totalorder %v376_v0, 12  ;;  %vm253_vm10 = vcmp.eq.s32.totalorder %v381_v1, 13  ;;  %vm252_vm11 = vcmp.eq.s32.totalorder %v376_v0, 13 }
   0xf   :  { %v237_v27 = vsel %vm235_vm8, 1, %v354_v2  ;;  %v236_v28 = vsel %vm234_vm9, 1, %v354_v2  ;;  %v255_v29 = vsel %vm253_vm10, 1, %v354_v2  ;;  %v254_v30 = vsel %vm252_vm11, 1, %v354_v2 }
  0x10   :  { %80 = vperm.xlu1 %329, %v75_v9   ;;  %77 = vperm.xlu0 %328, %v74_v10   ;;  %vm271_vm12 = vcmp.eq.s32.totalorder %v381_v1, 14  ;;  %vm270_vm13 = vcmp.eq.s32.totalorder %v376_v0, 14  ;;  %vm289_vm14 = vcmp.eq.s32.totalorder %v381_v1, 15  ;;  %vm288_vm15 = vcmp.eq.s32.totalorder %v376_v0, 15 }
  0x11   :  { %v273_v31 = vsel %vm271_vm12, 1, %v354_v2  ;;  %v272_v32 = vsel %vm270_vm13, 1, %v354_v2  ;;  %v291_v33 = vsel %vm289_vm14, 1, %v354_v2  ;;  %v290_v34 = vsel %vm288_vm15, 1, %v354_v2 }
  0x12   :  { %v30_v51 = vlaneseq  ;;  %v16_v58 = vmul.f32 0.125, %v14_v55  ;;  %v17_v4 = vmul.f32 0.125, %v15_v61 }
  0x14   :  { %98 = vperm.xlu1 %329, %v93_v11   ;;  %95 = vperm.xlu0 %328, %v92_v12   ;;  %v31_v54 = vshrl.u32 %v30_v51, 7 }
  0x16   :  { %v32_v59 = vsub.s32 0, %v31_v54  ;;  %v50_v60 = vsub.s32 1, %v31_v54  ;;  %v68_v62 = vsub.s32 2, %v31_v54  ;;  %v86_v63 = vsub.s32 3, %v31_v54 }
  0x17   :  { %v104_v0 = vsub.s32 4, %v31_v54  ;;  %v122_v1 = vsub.s32 5, %v31_v54  ;;  %v140_v2 = vsub.s32 6, %v31_v54  ;;  %v158_v3 = vsub.s32 7, %v31_v54 }
  0x18   :  { %116 = vperm.xlu1 %329, %v111_v13   ;;  %113 = vperm.xlu0 %328, %v110_v14   ;;  %v33_v7 = vrot.slane %v16_v58, %v32_v59  ;;  %v51_v8 = vrot.slane %v16_v58, %v50_v60  ;;  %v69_v9 = vrot.slane %v16_v58, %v68_v62 }
  0x19   :  { %v87_v10 = vrot.slane %v16_v58, %v86_v63  ;;  %v105_v11 = vrot.slane %v16_v58, %v104_v0  ;;  %v123_v12 = vrot.slane %v16_v58, %v122_v1  ;;  %v141_v13 = vrot.slane %v16_v58, %v140_v2 }
  0x1a   :  { %v159_v14 = vrot.slane %v16_v58, %v158_v3 }
  0x1c   :  { %134 = vperm.xlu1 %329, %v129_v15   ;;  %131 = vperm.xlu0 %328, %v128_v16   ;;  %v177_v15 = vrot.slane %v17_v4, %v32_v59  ;;  %v195_v16 = vrot.slane %v17_v4, %v50_v60 }
  0x20   :  { %152 = vperm.xlu1 %329, %v147_v17   ;;  %149 = vperm.xlu0 %328, %v146_v18   ;;  %v213_v17 = vrot.slane %v17_v4, %v68_v62  ;;  %v495_v18 = vrot.slane %v17_v4, %v86_v63 }
  0x24   :  { %170 = vperm.xlu1 %329, %v165_v19   ;;  %167 = vperm.xlu0 %328, %v164_v20  }
  0x28   :  { %188 = vperm.xlu1 %329, %v183_v21   ;;  %185 = vperm.xlu0 %328, %v182_v22  }
  0x2c   :  { %206 = vperm.xlu1 %329, %v201_v23   ;;  %203 = vperm.xlu0 %328, %v200_v24   ;;  %v249_v23 = vrot.slane %v17_v4, %v104_v0  ;;  %v267_v24 = vrot.slane %v17_v4, %v122_v1 }
  0x30   :  { %224 = vperm.xlu1 %329, %v219_v25   ;;  %221 = vperm.xlu0 %328, %v218_v26   ;;  %v508_v25 = vrot.slane %v17_v4, %v140_v2  ;;  %v510_v26 = vrot.slane %v17_v4, %v158_v3 }
  0x34   :  { %242 = vperm.xlu1 %329, %v237_v27   ;;  %239 = vperm.xlu0 %328, %v236_v28  }
  0x38   :  { %260 = vperm.xlu1 %329, %v255_v29   ;;  %257 = vperm.xlu0 %328, %v254_v30  }
  0x3c   :  { %278 = vperm.xlu1 %329, %v273_v31   ;;  %275 = vperm.xlu0 %328, %v272_v32  }
  0x40   :  { %296 = vperm.xlu1 %329, %v291_v33   ;;  %293 = vperm.xlu0 %328, %v290_v34  }
  0x83   :  { %v449_v35 = vpop.permute.xlu1 %41  ;;  %v24_v36 = vpop.permute.xlu0 %23 }
  0x84   :  { %vm28_vm0 = vcmp.eq.s32.totalorder %v24_v36, 1  ;;  %vm46_vm2 = vcmp.eq.s32.totalorder %v449_v35, 1 }
  0x85   :  { %v34_v21 = vsel %vm28_vm0, %v33_v7, 0.0 }
  0x86   :  { %v52_v27 = vsel %vm46_vm2, %v51_v8, %v34_v21 }
  0x87   :  { %v451_v37 = vpop.permute.xlu1 %44  ;;  %v27_v38 = vpop.permute.xlu0 %26 }
  0x88   :  { %vm29_vm1 = vcmp.eq.s32.totalorder %v27_v38, 1  ;;  %vm47_vm3 = vcmp.eq.s32.totalorder %v451_v37, 1 }
  0x89   :  { %v35_v22 = vsel %vm29_vm1, %v33_v7, 0.0 }
  0x8a   :  { %v53_v28 = vsel %vm47_vm3, %v51_v8, %v35_v22 }
  0x8b   :  { %v453_v39 = vpop.permute.xlu1 %62  ;;  %v455_v40 = vpop.permute.xlu0 %59 }
  0x8c   :  { %vm65_vm4 = vcmp.eq.s32.totalorder %v453_v39, 1  ;;  %vm64_vm5 = vcmp.eq.s32.totalorder %v455_v40, 1 }
  0x8d   :  { %v71_v31 = vsel %vm65_vm4, %v69_v9, %v53_v28  ;;  %v70_v32 = vsel %vm64_vm5, %v69_v9, %v52_v27 }
  0x8f   :  { %v457_v41 = vpop.permute.xlu1 %80  ;;  %v459_v42 = vpop.permute.xlu0 %77 }
  0x90   :  { %vm83_vm6 = vcmp.eq.s32.totalorder %v457_v41, 1  ;;  %vm82_vm7 = vcmp.eq.s32.totalorder %v459_v42, 1 }
  0x91   :  { %v89_v33 = vsel %vm83_vm6, %v87_v10, %v71_v31  ;;  %v88_v34 = vsel %vm82_vm7, %v87_v10, %v70_v32 }
  0x93   :  { %v461_v43 = vpop.permute.xlu1 %98  ;;  %v463_v44 = vpop.permute.xlu0 %95 }
  0x94   :  { %vm101_vm8 = vcmp.eq.s32.totalorder %v461_v43, 1  ;;  %vm100_vm9 = vcmp.eq.s32.totalorder %v463_v44, 1 }
  0x95   :  { %v107_v35 = vsel %vm101_vm8, %v105_v11, %v89_v33  ;;  %v106_v36 = vsel %vm100_vm9, %v105_v11, %v88_v34 }
  0x97   :  { %v465_v45 = vpop.permute.xlu1 %116  ;;  %v467_v46 = vpop.permute.xlu0 %113 }
  0x98   :  { %vm119_vm10 = vcmp.eq.s32.totalorder %v465_v45, 1  ;;  %vm118_vm11 = vcmp.eq.s32.totalorder %v467_v46, 1 }
  0x99   :  { %v125_v37 = vsel %vm119_vm10, %v123_v12, %v107_v35  ;;  %v124_v38 = vsel %vm118_vm11, %v123_v12, %v106_v36 }
  0x9b   :  { %v469_v47 = vpop.permute.xlu1 %134  ;;  %v471_v48 = vpop.permute.xlu0 %131 }
  0x9c   :  { %vm137_vm12 = vcmp.eq.s32.totalorder %v469_v47, 1  ;;  %vm136_vm13 = vcmp.eq.s32.totalorder %v471_v48, 1 }
  0x9d   :  { %v143_v41 = vsel %vm137_vm12, %v141_v13, %v125_v37  ;;  %v142_v42 = vsel %vm136_vm13, %v141_v13, %v124_v38 }
  0x9f   :  { %v473_v49 = vpop.permute.xlu1 %152  ;;  %v475_v50 = vpop.permute.xlu0 %149 }
  0xa0   :  { %vm155_vm14 = vcmp.eq.s32.totalorder %v473_v49, 1  ;;  %vm154_vm15 = vcmp.eq.s32.totalorder %v475_v50, 1 }
  0xa1   :  { %v161_v43 = vsel %vm155_vm14, %v159_v14, %v143_v41  ;;  %v160_v44 = vsel %vm154_vm15, %v159_v14, %v142_v42 }
  0xa3   :  { %v477_v52 = vpop.permute.xlu1 %170  ;;  %v479_v53 = vpop.permute.xlu0 %167 }
  0xa4   :  { %vm173_vm0 = vcmp.eq.s32.totalorder %v477_v52, 1  ;;  %vm172_vm1 = vcmp.eq.s32.totalorder %v479_v53, 1 }
  0xa5   :  { %v179_v45 = vsel %vm173_vm0, %v177_v15, %v161_v43  ;;  %v178_v46 = vsel %vm172_vm1, %v177_v15, %v160_v44 }
  0xa7   :  { %v484_v56 = vpop.permute.xlu1 %188  ;;  %v486_v57 = vpop.permute.xlu0 %185 }
  0xa8   :  { %vm191_vm2 = vcmp.eq.s32.totalorder %v484_v56, 1  ;;  %vm190_vm3 = vcmp.eq.s32.totalorder %v486_v57, 1 }
  0xa9   :  { %v197_v47 = vsel %vm191_vm2, %v195_v16, %v179_v45  ;;  %v196_v48 = vsel %vm190_vm3, %v195_v16, %v178_v46 }
  0xab   :  { %v491_v5 = vpop.permute.xlu1 %206  ;;  %v493_v6 = vpop.permute.xlu0 %203 }
  0xac   :  { %vm209_vm4 = vcmp.eq.s32.totalorder %v491_v5, 1  ;;  %vm208_vm5 = vcmp.eq.s32.totalorder %v493_v6, 1 }
  0xad   :  { %v215_v51 = vsel %vm209_vm4, %v213_v17, %v197_v47  ;;  %v214_v52 = vsel %vm208_vm5, %v213_v17, %v196_v48 }
  0xaf   :  { %v497_v19 = vpop.permute.xlu1 %224  ;;  %v499_v20 = vpop.permute.xlu0 %221 }
  0xb0   :  { %vm227_vm6 = vcmp.eq.s32.totalorder %v497_v19, 1  ;;  %vm226_vm7 = vcmp.eq.s32.totalorder %v499_v20, 1 }
  0xb1   :  { %v233_v53 = vsel %vm227_vm6, %v495_v18, %v215_v51  ;;  %v232_v54 = vsel %vm226_vm7, %v495_v18, %v214_v52 }
  0xb3   :  { %v243_v29 = vpop.permute.xlu1 %242  ;;  %v240_v30 = vpop.permute.xlu0 %239 }
  0xb4   :  { %vm245_vm8 = vcmp.eq.s32.totalorder %v243_v29, 1  ;;  %vm244_vm9 = vcmp.eq.s32.totalorder %v240_v30, 1 }
  0xb5   :  { %v251_v55 = vsel %vm245_vm8, %v249_v23, %v233_v53  ;;  %v250_v56 = vsel %vm244_vm9, %v249_v23, %v232_v54 }
  0xb7   :  { %v261_v39 = vpop.permute.xlu1 %260  ;;  %v258_v40 = vpop.permute.xlu0 %257 }
  0xb8   :  { %vm263_vm10 = vcmp.eq.s32.totalorder %v261_v39, 1  ;;  %vm262_vm11 = vcmp.eq.s32.totalorder %v258_v40, 1 }
  0xb9   :  { %v269_v57 = vsel %vm263_vm10, %v267_v24, %v251_v55  ;;  %v268_v58 = vsel %vm262_vm11, %v267_v24, %v250_v56 }
  0xbb   :  { %v279_v49 = vpop.permute.xlu1 %278  ;;  %v276_v50 = vpop.permute.xlu0 %275 }
  0xbc   :  { %vm281_vm12 = vcmp.eq.s32.totalorder %v279_v49, 1  ;;  %vm280_vm13 = vcmp.eq.s32.totalorder %v276_v50, 1 }
  0xbd   :  { %v287_v61 = vsel %vm281_vm12, %v508_v25, %v269_v57  ;;  %v286_v62 = vsel %vm280_vm13, %v508_v25, %v268_v58 }
  0xbf   :  { %v297_v59 = vpop.permute.xlu1 %296  ;;  %v294_v60 = vpop.permute.xlu0 %293 }
  0xc0   :  { %vm299_vm14 = vcmp.eq.s32.totalorder %v297_v59, 1  ;;  %vm298_vm15 = vcmp.eq.s32.totalorder %v294_v60, 1 }
  0xc1   :  { %v305_v63 = vsel %vm299_vm14, %v510_v26, %v287_v61  ;;  %v304_v0 = vsel %vm298_vm15, %v510_v26, %v286_v62 }
  0xc2   :  { %307 = vst [vmem:[#allocation2 + $0x8] sm:$0xff] %v305_v63  ;;  %306 = vst [vmem:[#allocation2] sm:$0xff] %v304_v0 }
  0xc3   :  { %341 = shalt.err (!%p338_p4)
}
  0xc4   :  { %s342_s20 = scalar_lea.hbm %s548_s2, 256 }
  0xc5   :  { %p343_p5 = scmp.ne.s32.totalorder %s548_s2, %s342_s20  ;;  %p346_p6 = scmp.lt.u32.totalorder %s342_s20, %s548_s2 }
  0xc7   :  { %p348_p7 = pnand %p346_p6, %p343_p5 }
  0xc9   :  { %351 = shalt.err (!%p348_p7)
}
  0xca   :  { %s356_s25 = smov 128   ;;  %s357_s26 = smov 8  }
  0xcb   :  { %319 = dma.vmem_to_hbm [thread:$0]  %s314_s16, 256, %s548_s2, [#allocation3], %s356_s25, %s356_s25, %s357_s26  }
  0xcc   :  { %352 = dma.done.wait [#allocation3], 256  }
  0xcd   :  { %353 = vsyncadd [#allocation3], 4294967040 }
  0xce   :  { %323 = vsyncpa [#allocation3], 1 }

</bundles_post_ra>
